<compile_context>
chip_gen: v7x
topology: tpu7x:2x2x1
jax: 0.10.0
libtpu: 0.0.40
codegen_flags: <defaults>
</compile_context>

<pallas_src>
import jax
import jax.numpy as jnp
from jax import lax
from jax.experimental import pallas as pl
from jax.experimental.pallas import tpu as pltpu


def relu_ae_kernel(x_ref, w1_ref, b1_ref, w2_ref, b2_ref, o_ref):
    """One (TB, dim) batch tile of: relu(x @ W1.T + b1) @ W2.T + b2."""
    x = x_ref[...]                                           # (TB, dim) f32
    # Encoder: contract feature axis of x with axis 1 of W1 (K, dim) -> (TB, K).
    h = lax.dot_general(
        x, w1_ref[...],
        dimension_numbers=(((1,), (1,)), ((), ())),
        preferred_element_type=jnp.float32)
    h = jnp.maximum(h + b1_ref[...], 0.0)                    # bias + ReLU (f32, VPU)
    # Decoder: contract K with axis 1 of W2 (dim, K) -> (TB, dim).
    y = lax.dot_general(
        h, w2_ref[...],
        dimension_numbers=(((1,), (1,)), ((), ())),
        preferred_element_type=jnp.float32)
    o_ref[...] = (y + b2_ref[...]).astype(o_ref.dtype)       # batch-major store


def _round_up(n, m):
    return ((n + m - 1) // m) * m


def relu_ae_forward(x, w1, b1, w2, b2, *, block_batch=8192):
    """Fused Linear(dim->K) -> ReLU -> Linear(K->dim).

    x : (B, dim) float32
    w1: (K, dim), b1: (K,)      (PyTorch nn.Linear layout: (out, in))
    w2: (dim, K), b2: (dim,)
    Returns (B, dim) float32 (same layout as the PyTorch module).
    """
    B, dim = x.shape
    K = w1.shape[0]

    # --- batch tile selection ------------------------------------------------
    # Sublane granularity 8.  Cap at 16384 rows so double-buffered, 128-lane-
    # padded f32 x/out tiles (~TB*512 B each per buffer) stay well inside VMEM
    # on every generation.  Keep >=2 grid steps so the "parallel" axis can
    # shard across both TensorCores on v7x.
    TB = min(block_batch, 16384, _round_up(B, 8))
    if B > 8:
        TB = min(TB, _round_up(pl.cdiv(B, 2), 8))
    TB = max(8, _round_up(TB, 8))
    grid = (pl.cdiv(B, TB),)

    # VMEM budget: the (TB, 32) x/out tiles lane-pad to 128 lanes (4x footprint).
    tile_bytes = TB * 128 * 4                      # one lane-padded f32 buffer
    vmem_limit = min(max(2 * 2 * tile_bytes + (2 << 20), 32 << 20), 48 << 20)

    b1_r = b1.reshape(1, K)                        # broadcast over batch sublanes
    b2_r = b2.reshape(1, dim)

    return pl.pallas_call(
        relu_ae_kernel,
        out_shape=jax.ShapeDtypeStruct((B, dim), x.dtype),
        grid_spec=pltpu.PrefetchScalarGridSpec(
            num_scalar_prefetch=0,
            grid=grid,
            in_specs=[
                pl.BlockSpec((TB, dim), lambda i: (i, 0)),   # x rows (streamed)
                pl.BlockSpec((K, dim), lambda i: (0, 0)),    # W1 (VMEM-resident)
                pl.BlockSpec((1, K), lambda i: (0, 0)),      # b1 (resident)
                pl.BlockSpec((dim, K), lambda i: (0, 0)),    # W2 (resident)
                pl.BlockSpec((1, dim), lambda i: (0, 0)),    # b2 (resident)
            ],
            out_specs=pl.BlockSpec((TB, dim), lambda i: (i, 0)),
        ),
        compiler_params=pltpu.CompilerParams(
            dimension_semantics=("parallel",),
            vmem_limit_bytes=vmem_limit),
        cost_estimate=pl.CostEstimate(
            flops=4 * B * dim * K,
            transcendentals=0,
            bytes_accessed=2 * B * dim * 4 + (2 * K * dim + K + dim) * 4),
    )(x, w1, b1_r, w2, b2_r)


def relu_ae_reference(x, w1, b1, w2, b2):
    h = jnp.maximum(x @ w1.T + b1, 0.0)
    return h @ w2.T + b2


if __name__ == "__main__":
    # Small shapes consistent with the module: dim=32 features, K=8 bottleneck.
    batch, dim, K = 512, 32, 8

    key = jax.random.PRNGKey(0)
    kx, kw1, kb1, kw2, kb2 = jax.random.split(key, 5)

    x = jax.random.normal(kx, (batch, dim), dtype=jnp.float32)
    # PyTorch nn.Linear parameter layout: (out_features, in_features).
    w1 = jax.random.uniform(kw1, (K, dim), jnp.float32, -0.1, 0.1)
    b1 = jax.random.uniform(kb1, (K,), jnp.float32, -0.1, 0.1)
    w2 = jax.random.uniform(kw2, (dim, K), jnp.float32, -0.1, 0.1)
    b2 = jax.random.uniform(kb2, (dim,), jnp.float32, -0.1, 0.1)

    ref = relu_ae_reference(x, w1, b1, w2, b2)

    # Default path: TB is capped to batch/2 => 2 pipelined grid steps.
    out = relu_ae_forward(x, w1, b1, w2, b2)
    jax.block_until_ready(out)
    assert out.shape == (batch, dim)
    assert jnp.allclose(out, ref, atol=1e-4, rtol=1e-4), "mismatch vs reference"

    # Smaller tile: exercises a 4-step pipelined grid with the same kernel.
    out_small = relu_ae_forward(x, w1, b1, w2, b2, block_batch=128)
    jax.block_until_ready(out_small)
    assert out_small.shape == (batch, dim)
    assert jnp.allclose(out_small, ref, atol=1e-4, rtol=1e-4), "mismatch (TB=128)"

    print("KERNEL_OK")
</pallas_src>

<mosaic_0001>
module attributes {stable_mosaic.version = 11 : i64} {
  func.func @relu_ae_kernel(%arg0: i32, %arg1: memref<256x32xf32, #tpu.memory_space<vmem>>, %arg2: memref<8x32xf32, #tpu.memory_space<vmem>>, %arg3: memref<1x8xf32, #tpu.memory_space<vmem>>, %arg4: memref<32x8xf32, #tpu.memory_space<vmem>>, %arg5: memref<1x32xf32, #tpu.memory_space<vmem>>, %arg6: memref<256x32xf32, #tpu.memory_space<vmem>>) attributes {dimension_semantics = [#tpu.dimension_semantics<parallel>], iteration_bounds = array<i64: 2>, scalar_prefetch = 0 : i64, scratch_operands = 0 : i64, tpu.core_type = #tpu.core_type<tc>, window_params = [{transform_indices = @transform_0, window_bounds = array<i64: 256, 32>}, {pipeline_mode = #tpu.pipeline_mode<synchronous>, transform_indices = @transform_1, window_bounds = array<i64: 8, 32>}, {pipeline_mode = #tpu.pipeline_mode<synchronous>, transform_indices = @transform_2, window_bounds = array<i64: 1, 8>}, {pipeline_mode = #tpu.pipeline_mode<synchronous>, transform_indices = @transform_3, window_bounds = array<i64: 32, 8>}, {pipeline_mode = #tpu.pipeline_mode<synchronous>, transform_indices = @transform_4, window_bounds = array<i64: 1, 32>}, {transform_indices = @transform_5, window_bounds = array<i64: 256, 32>}]} {
    %c0 = arith.constant 0 : index
    %c0_0 = arith.constant 0 : index
    %0 = vector.load %arg1[%c0, %c0_0] : memref<256x32xf32, #tpu.memory_space<vmem>>, vector<256x32xf32>
    %c0_1 = arith.constant 0 : index
    %c0_2 = arith.constant 0 : index
    %1 = vector.load %arg2[%c0_1, %c0_2] : memref<8x32xf32, #tpu.memory_space<vmem>>, vector<8x32xf32>
    %cst = arith.constant dense<0.000000e+00> : vector<256x8xf32>
    %2 = tpu.matmul %0, %1, %cst {dimension_numbers = #tpu.dot_dimension_numbers<[1], [1], [0], [0], [0, 0, 1, 0], [], []>} : vector<256x32xf32>, vector<8x32xf32>, vector<256x8xf32> -> vector<256x8xf32>
    %c0_3 = arith.constant 0 : index
    %c0_4 = arith.constant 0 : index
    %3 = vector.load %arg3[%c0_3, %c0_4] : memref<1x8xf32, #tpu.memory_space<vmem>>, vector<1x8xf32>
    %4 = vector.broadcast %3 : vector<1x8xf32> to vector<256x8xf32>
    %5 = arith.addf %2, %4 : vector<256x8xf32>
    %cst_5 = arith.constant 0.000000e+00 : f32
    %6 = vector.broadcast %cst_5 : f32 to vector<256x8xf32>
    %7 = arith.maximumf %5, %6 : vector<256x8xf32>
    %c0_6 = arith.constant 0 : index
    %c0_7 = arith.constant 0 : index
    %8 = vector.load %arg4[%c0_6, %c0_7] : memref<32x8xf32, #tpu.memory_space<vmem>>, vector<32x8xf32>
    %cst_8 = arith.constant dense<0.000000e+00> : vector<256x32xf32>
    %9 = tpu.matmul %7, %8, %cst_8 {dimension_numbers = #tpu.dot_dimension_numbers<[1], [1], [0], [0], [0, 0, 1, 0], [], []>} : vector<256x8xf32>, vector<32x8xf32>, vector<256x32xf32> -> vector<256x32xf32>
    %c0_9 = arith.constant 0 : index
    %c0_10 = arith.constant 0 : index
    %10 = vector.load %arg5[%c0_9, %c0_10] : memref<1x32xf32, #tpu.memory_space<vmem>>, vector<1x32xf32>
    %11 = vector.broadcast %10 : vector<1x32xf32> to vector<256x32xf32>
    %12 = arith.addf %9, %11 : vector<256x32xf32>
    %c0_11 = arith.constant 0 : index
    %c0_12 = arith.constant 0 : index
    %13 = vector.load %arg6[%c0_11, %c0_12] : memref<256x32xf32, #tpu.memory_space<vmem>>, vector<256x32xf32>
    tpu.vector_store %arg6[%c0_11, %c0_12], %12 {strides = array<i32>} : memref<256x32xf32, #tpu.memory_space<vmem>>, vector<256x32xf32>,
    return
  }
  func.func @transform_0(%arg0: i32) -> (i32, i32) {
    %c0_i32 = arith.constant 0 : i32
    %c0_i32_0 = arith.constant 0 : i32
    return %arg0, %c0_i32 : i32, i32
  }
  func.func @transform_1(%arg0: i32) -> (i32, i32) {
    %c0_i32 = arith.constant 0 : i32
    %c0_i32_0 = arith.constant 0 : i32
    %c0_i32_1 = arith.constant 0 : i32
    return %c0_i32, %c0_i32_0 : i32, i32
  }
  func.func @transform_2(%arg0: i32) -> (i32, i32) {
    %c0_i32 = arith.constant 0 : i32
    %c0_i32_0 = arith.constant 0 : i32
    %c0_i32_1 = arith.constant 0 : i32
    return %c0_i32, %c0_i32_0 : i32, i32
  }
  func.func @transform_3(%arg0: i32) -> (i32, i32) {
    %c0_i32 = arith.constant 0 : i32
    %c0_i32_0 = arith.constant 0 : i32
    %c0_i32_1 = arith.constant 0 : i32
    return %c0_i32, %c0_i32_0 : i32, i32
  }
  func.func @transform_4(%arg0: i32) -> (i32, i32) {
    %c0_i32 = arith.constant 0 : i32
    %c0_i32_0 = arith.constant 0 : i32
    %c0_i32_1 = arith.constant 0 : i32
    return %c0_i32, %c0_i32_0 : i32, i32
  }
  func.func @transform_5(%arg0: i32) -> (i32, i32) {
    %c0_i32 = arith.constant 0 : i32
    %c0_i32_0 = arith.constant 0 : i32
    return %arg0, %c0_i32 : i32, i32
  }
}

</mosaic_0001>

<bundles_post_ra>
// kernel: tpu_custom_call.1
= control target key start
LH: loop header
LB: loop body
LE: loop exit
PB: predicated region body
PF: predicated region fallthrough
CT: control target
= control target key end

     0   :  { %s1377_s18 = smov 0   ;;  %s1678_s0 = inlined_call_operand.vmem [shape: f32[512,32], index: 0, kind: input, shape index: {}]   ;;  %s1679_s1 = inlined_call_operand.vmem [shape: f32[8,32], index: 1, kind: input, shape index: {}]   ;;  %s1680_s2 = inlined_call_operand.vmem [shape: f32[1,8], index: 2, kind: input, shape index: {}]   ;;  %s1681_s3 = inlined_call_operand.vmem [shape: f32[32,8], index: 3, kind: input, shape index: {}]   ;;  %s1682_s4 = inlined_call_operand.vmem [shape: f32[1,32], index: 4, kind: input, shape index: {}]   ;;  %s1683_s5 = inlined_call_operand.vmem [shape: f32[512,32], index: 5, kind: output, shape index: {}]  }
   0x1 LB: > { %s1058_s19 = sadd.s32 4294967295, %s1345_s18   ;;  %p1062_p0 = scmp.ge.s32.totalorder %s1345_s18, 1  ;;  %s1345_s18 = sphi %s1377_s18, %s15_s18  }
   0x2   : > { %p188_p1 = scmp.lt.s32.totalorder %s1345_s18, 3 }
   0x4   : > { %p189_p2 = pnand %p1062_p0, %p188_p1 }
   0x5   : > { %v260_v0 = vld [vmem:[%s1679_s1] sm:$0xff] (!%p189_p2)  ;;  %vm268_vm0 = vcmask (!%p189_p2), 261120   ;;  %s1063_s22 = sshll.u32 (!%p189_p2), %s1058_s19, 5  ;;  %v626_v2 = vld [vmem:[%s1681_s3 + $0x8] sm:$0xff] (!%p189_p2)  ;;  %vm636_vm1 = vcmask (!%p189_p2), 64512   ;;  %v627_v5 = vld [vmem:[%s1681_s3 + $0x10] sm:$0xff] (!%p189_p2) }
   0x6   : > { %192 = sbr.rel (%p189_p2) target bundleno = 512 (0x200), region = 40  ;;  %v625_v1 = vld [vmem:[%s1681_s3] sm:$0xff] (!%p189_p2)  ;;  %1209 = vmatprep.subr.msk.mxu0 (!%p189_p2), %vm268_vm0, %v260_v0  ;;  %p217_p3 = scmp.lt.s32.totalorder (!%p189_p2), %s1063_s22, 63  ;;  %vm1397_vm2 = vmpackc.low (!%p189_p2), %vm636_vm1, %vm636_vm1  ;;  %v628_v6 = vld [vmem:[%s1681_s3 + $0x18] sm:$0xff] (!%p189_p2) }
   0x7   : > { %v1315_v3 = vpack.c.bf16 (!%p189_p2), %v626_v2, %v625_v1  ;;  %1210 = vmatpush3.xpose.msk.msra.mxu0 (!%p189_p2), %vm268_vm0, %v260_v0  ;;  %v1321_v7 = vpack.c.bf16 (!%p189_p2), %v628_v6, %v627_v5  ;;  %v1501_v40 = vld [vmem:[%s1680_s2] ss:$0 sm:$0xff] (!%p189_p2) }
   0x9   : > { %1317 = vmatprep.subr.msk.bf16.mxu0 (!%p189_p2), %vm1397_vm2, %v1315_v3  ;;  %1327 = vmatprep.subr.msk.bf16.mxu1 (!%p189_p2), %vm1397_vm2, %v1315_v3 }
   0xa   : > { %1329 = vmatpush3.bf16.xpose.msk.msra.mxu1 (!%p189_p2), %vm1397_vm2, %v1315_v3 }
   0xb   : > { %1328 = vmatprep.subr.msk.bf16.mxu1 (!%p189_p2), %vm1397_vm2, %v1321_v7 }
   0xd   : > { %s1687_s22 = smov (!%p217_p3, %s1063_s22), 63 }
   0xe   : > { %s1064_s6 = sshll.u32 %s1687_s22, 3 }
   0xf   : > { %s1424_s9 = scalar_lea.vmem %s1678_s0, %s1064_s6  ;;  %s1577_s16 = scalar_lea.vmem %s1683_s5, %s1064_s6 }
  0x10   : > { %v228_v8 = vld [vmem:[%s1424_s9] sm:$0xff]  ;;  %v229_v9 = vld [vmem:[%s1424_s9 + $0x8] sm:$0xff]  ;;  %v230_v10 = vld [vmem:[%s1424_s9 + $0x10] sm:$0xff] }
  0x11   : > { %1211 = vmatprep.mubr.msk.f32.mxu0 %vm268_vm0, %v228_v8  ;;  %v231_v11 = vld [vmem:[%s1424_s9 + $0x18] sm:$0xff]  ;;  %v232_v12 = vld [vmem:[%s1424_s9 + $0x20] sm:$0xff]  ;;  %v233_v13 = vld [vmem:[%s1424_s9 + $0x28] sm:$0xff] }
  0x12   : > { %1212 = vmatmul.mubr.msk.f32.vlgmr.msra.gmra.mrb[0].mxu0 %vm268_vm0, %v229_v9  ;;  %1330 = vmatpush3.bf16.xpose.msk.msra.mxu1 %vm1397_vm2, %v1321_v7  ;;  %v234_v14 = vld [vmem:[%s1424_s9 + $0x30] sm:$0xff]  ;;  %v235_v15 = vld [vmem:[%s1424_s9 + $0x38] sm:$0xff]  ;;  %v236_v16 = vld [vmem:[%s1424_s9 + $0x40] sm:$0xff] }
  0x13   : > { %1214 = vmatprep.mubr.msk.f32.mxu0 %vm268_vm0, %v230_v10  ;;  %1320 = vmatpush3.bf16.xpose.msk.msra.mxu0 %vm1397_vm2, %v1315_v3  ;;  %v237_v17 = vld [vmem:[%s1424_s9 + $0x48] sm:$0xff]  ;;  %v238_v18 = vld [vmem:[%s1424_s9 + $0x50] sm:$0xff]  ;;  %v239_v19 = vld [vmem:[%s1424_s9 + $0x58] sm:$0xff] }
  0x14   : > { %1323 = vmatprep.subr.msk.bf16.mxu0 %vm1397_vm2, %v1321_v7  ;;  %v240_v20 = vld [vmem:[%s1424_s9 + $0x60] sm:$0xff]  ;;  %v241_v21 = vld [vmem:[%s1424_s9 + $0x68] sm:$0xff]  ;;  %v242_v22 = vld [vmem:[%s1424_s9 + $0x70] sm:$0xff] }
  0x15   : > { %v243_v23 = vld [vmem:[%s1424_s9 + $0x78] sm:$0xff]  ;;  %v244_v24 = vld [vmem:[%s1424_s9 + $0x80] sm:$0xff]  ;;  %v245_v25 = vld [vmem:[%s1424_s9 + $0x88] sm:$0xff] }
  0x16   : > { %1215 = vmatmul.mubr.msk.f32.gmra.mrb[2].mxu0 %vm268_vm0, %v231_v11  ;;  %v246_v26 = vld [vmem:[%s1424_s9 + $0x90] sm:$0xff]  ;;  %v247_v27 = vld [vmem:[%s1424_s9 + $0x98] sm:$0xff]  ;;  %v248_v28 = vld [vmem:[%s1424_s9 + $0xa0] sm:$0xff] }
  0x17   : > { %1217 = vmatprep.mubr.msk.f32.mxu0 %vm268_vm0, %v232_v12  ;;  %v249_v29 = vld [vmem:[%s1424_s9 + $0xa8] sm:$0xff]  ;;  %v250_v30 = vld [vmem:[%s1424_s9 + $0xb0] sm:$0xff]  ;;  %v251_v31 = vld [vmem:[%s1424_s9 + $0xb8] sm:$0xff] }
  0x18   : > { %v252_v32 = vld [vmem:[%s1424_s9 + $0xc0] sm:$0xff]  ;;  %v253_v33 = vld [vmem:[%s1424_s9 + $0xc8] sm:$0xff]  ;;  %v254_v34 = vld [vmem:[%s1424_s9 + $0xd0] sm:$0xff] }
  0x19   : > { %v255_v35 = vld [vmem:[%s1424_s9 + $0xd8] sm:$0xff]  ;;  %v256_v36 = vld [vmem:[%s1424_s9 + $0xe0] sm:$0xff]  ;;  %v257_v37 = vld [vmem:[%s1424_s9 + $0xe8] sm:$0xff] }
  0x1a   : > { %1218 = vmatmul.mubr.msk.f32.gmra.mrb[4].mxu0 %vm268_vm0, %v233_v13  ;;  %v258_v38 = vld [vmem:[%s1424_s9 + $0xf0] sm:$0xff]  ;;  %v259_v39 = vld [vmem:[%s1424_s9 + $0xf8] sm:$0xff] }
  0x1b   : > { %1220 = vmatprep.mubr.msk.f32.mxu0 %vm268_vm0, %v234_v14  ;;  %1326 = vmatpush3.bf16.xpose.msk.msra.mxu0 %vm1397_vm2, %v1321_v7 }
  0x1e   : > { %1221 = vmatmul.mubr.msk.f32.gmra.mrb[6].mxu0 %vm268_vm0, %v235_v15 }
  0x1f   : > { %1223 = vmatprep.mubr.msk.f32.mxu0 %vm268_vm0, %v236_v16 }
  0x22   : > { %1224 = vmatmul.mubr.msk.f32.gmra.mrb[8].mxu0 %vm268_vm0, %v237_v17 }
  0x23   : > { %1226 = vmatprep.mubr.msk.f32.mxu0 %vm268_vm0, %v238_v18 }
  0x26   : > { %1227 = vmatmul.mubr.msk.f32.gmra.mrb[10].mxu0 %vm268_vm0, %v239_v19 }
  0x27   : > { %1229 = vmatprep.mubr.msk.f32.mxu0 %vm268_vm0, %v240_v20 }
  0x2a   : > { %1230 = vmatmul.mubr.msk.f32.gmra.mrb[12].mxu0 %vm268_vm0, %v241_v21 }
  0x2b   : > { %1232 = vmatprep.mubr.msk.f32.mxu0 %vm268_vm0, %v242_v22 }
  0x2e   : > { %1233 = vmatmul.mubr.msk.f32.gmra.mrb[14].mxu0 %vm268_vm0, %v243_v23 }
  0x2f   : > { %1235 = vmatprep.mubr.msk.f32.mxu0 %vm268_vm0, %v244_v24 }
  0x32   : > { %1236 = vmatmul.mubr.msk.f32.gmra.mrb[16].mxu0 %vm268_vm0, %v245_v25 }
  0x33   : > { %1238 = vmatprep.mubr.msk.f32.mxu0 %vm268_vm0, %v246_v26 }
  0x36   : > { %1239 = vmatmul.mubr.msk.f32.gmra.mrb[18].mxu0 %vm268_vm0, %v247_v27 }
  0x37   : > { %1241 = vmatprep.mubr.msk.f32.mxu0 %vm268_vm0, %v248_v28 }
  0x3a   : > { %1242 = vmatmul.mubr.msk.f32.gmra.mrb[20].mxu0 %vm268_vm0, %v249_v29 }
  0x3b   : > { %1244 = vmatprep.mubr.msk.f32.mxu0 %vm268_vm0, %v250_v30 }
  0x3e   : > { %1245 = vmatmul.mubr.msk.f32.gmra.mrb[22].mxu0 %vm268_vm0, %v251_v31 }
  0x3f   : > { %1247 = vmatprep.mubr.msk.f32.mxu0 %vm268_vm0, %v252_v32 }
  0x42   : > { %1248 = vmatmul.mubr.msk.f32.gmra.mrb[24].mxu0 %vm268_vm0, %v253_v33 }
  0x43   : > { %1250 = vmatprep.mubr.msk.f32.mxu0 %vm268_vm0, %v254_v34 }
  0x46   : > { %1251 = vmatmul.mubr.msk.f32.gmra.mrb[26].mxu0 %vm268_vm0, %v255_v35 }
  0x47   : > { %1253 = vmatprep.mubr.msk.f32.mxu0 %vm268_vm0, %v256_v36 }
  0x4a   : > { %1254 = vmatmul.mubr.msk.f32.gmra.mrb[28].mxu0 %vm268_vm0, %v257_v37 }
  0x4b   : > { %1256 = vmatprep.mubr.msk.f32.mxu0 %vm268_vm0, %v258_v38 }
  0x4e   : > { %1257 = vmatmul.mubr.msk.f32.gmra.mrb[30].mxu0 %vm268_vm0, %v259_v39 }
  0xe5   : > { %v1213_v41 = vpop.f32.mrb[0].mxu0 }
  0xe6   : > { %v440_v42 = vadd.f32 %v1213_v41, %v1501_v40  ;;  %v434_v43 = vpop.f32.mrb[1].mxu0 }
  0xe7   : > { %v435_v44 = vadd.f32 %v1501_v40, %v434_v43 }
  0xe8   : > { %v594_v47 = vmax.f32 %v440_v42, 0.0 }
  0xe9   : > { %v593_v45 = vmax.f32 %v435_v44, 0.0  ;;  %v1216_v46 = vpop.f32.mrb[2].mxu0 }
  0xea   : > { %v450_v48 = vadd.f32 %v1216_v46, %v1501_v40  ;;  %v444_v49 = vpop.f32.mrb[3].mxu0 }
  0xeb   : > { %v445_v50 = vadd.f32 %v1501_v40, %v444_v49  ;;  %1267 = vmatprep.mubr.msk.f32.mxu0 %vm636_vm1, %v593_v45 }
  0xec   : > { %1268 = vmatmul.mubr.msk.f32.vlgmr.msra.gmra.mrb[32].mxu0 %vm636_vm1, %v594_v47  ;;  %v596_v53 = vmax.f32 %v450_v48, 0.0 }
  0xed   : > { %v595_v51 = vmax.f32 %v445_v50, 0.0  ;;  %v1219_v52 = vpop.f32.mrb[4].mxu0 }
  0xee   : > { %v460_v54 = vadd.f32 %v1219_v52, %v1501_v40  ;;  %v454_v55 = vpop.f32.mrb[5].mxu0 }
  0xef   : > { %v455_v56 = vadd.f32 %v1501_v40, %v454_v55  ;;  %1270 = vmatprep.mubr.msk.f32.mxu1 %vm636_vm1, %v595_v51 }
  0xf0   : > { %1271 = vmatmul.mubr.msk.f32.vlgmr.msra.gmra.mrb[0].mxu1 %vm636_vm1, %v596_v53  ;;  %v598_v59 = vmax.f32 %v460_v54, 0.0 }
  0xf1   : > { %v597_v57 = vmax.f32 %v455_v56, 0.0  ;;  %v1222_v58 = vpop.f32.mrb[6].mxu0 }
  0xf2   : > { %v470_v60 = vadd.f32 %v1222_v58, %v1501_v40  ;;  %v464_v61 = vpop.f32.mrb[7].mxu0 }
  0xf3   : > { %v465_v62 = vadd.f32 %v1501_v40, %v464_v61  ;;  %1273 = vmatprep.mubr.msk.f32.mxu1 %vm636_vm1, %v597_v57 }
  0xf4   : > { %1274 = vmatmul.mubr.msk.f32.gmra.mrb[2].mxu1 %vm636_vm1, %v598_v59  ;;  %v600_v1 = vmax.f32 %v470_v60, 0.0 }
  0xf5   : > { %v599_v63 = vmax.f32 %v465_v62, 0.0  ;;  %v1225_v0 = vpop.f32.mrb[8].mxu0 }
  0xf6   : > { %v480_v2 = vadd.f32 %v1225_v0, %v1501_v40  ;;  %v474_v3 = vpop.f32.mrb[9].mxu0 }
  0xf7   : > { %v475_v4 = vadd.f32 %v1501_v40, %v474_v3  ;;  %1276 = vmatprep.mubr.msk.f32.mxu1 %vm636_vm1, %v599_v63 }
  0xf8   : > { %1277 = vmatmul.mubr.msk.f32.gmra.mrb[4].mxu1 %vm636_vm1, %v600_v1  ;;  %v602_v7 = vmax.f32 %v480_v2, 0.0 }
  0xf9   : > { %v601_v5 = vmax.f32 %v475_v4, 0.0  ;;  %v1228_v6 = vpop.f32.mrb[10].mxu0 }
  0xfa   : > { %v490_v8 = vadd.f32 %v1228_v6, %v1501_v40  ;;  %v484_v9 = vpop.f32.mrb[11].mxu0 }
  0xfb   : > { %v485_v10 = vadd.f32 %v1501_v40, %v484_v9  ;;  %1279 = vmatprep.mubr.msk.f32.mxu1 %vm636_vm1, %v601_v5 }
  0xfc   : > { %1280 = vmatmul.mubr.msk.f32.gmra.mrb[6].mxu1 %vm636_vm1, %v602_v7  ;;  %v604_v13 = vmax.f32 %v490_v8, 0.0 }
  0xfd   : > { %v603_v11 = vmax.f32 %v485_v10, 0.0  ;;  %v1231_v12 = vpop.f32.mrb[12].mxu0  ;;  %v1570_v10 = vld [vmem:[%s1682_s4] ss:$0 sm:$0xff] }
  0xfe   : > { %v500_v14 = vadd.f32 %v1231_v12, %v1501_v40  ;;  %v494_v15 = vpop.f32.mrb[13].mxu0 }
  0xff   : > { %v495_v16 = vadd.f32 %v1501_v40, %v494_v15  ;;  %1282 = vmatprep.mubr.msk.f32.mxu1 %vm636_vm1, %v603_v11 }
 0x100   : > { %1283 = vmatmul.mubr.msk.f32.gmra.mrb[8].mxu1 %vm636_vm1, %v604_v13  ;;  %v606_v19 = vmax.f32 %v500_v14, 0.0 }
 0x101   : > { %v605_v17 = vmax.f32 %v495_v16, 0.0  ;;  %v1234_v18 = vpop.f32.mrb[14].mxu0 }
 0x102   : > { %v510_v20 = vadd.f32 %v1234_v18, %v1501_v40  ;;  %v504_v21 = vpop.f32.mrb[15].mxu0 }
 0x103   : > { %v505_v22 = vadd.f32 %v1501_v40, %v504_v21  ;;  %1285 = vmatprep.mubr.msk.f32.mxu1 %vm636_vm1, %v605_v17 }
 0x104   : > { %1286 = vmatmul.mubr.msk.f32.gmra.mrb[10].mxu1 %vm636_vm1, %v606_v19  ;;  %v608_v25 = vmax.f32 %v510_v20, 0.0 }
 0x105   : > { %v607_v23 = vmax.f32 %v505_v22, 0.0  ;;  %v1237_v24 = vpop.f32.mrb[16].mxu0 }
 0x106   : > { %v520_v26 = vadd.f32 %v1237_v24, %v1501_v40  ;;  %v514_v27 = vpop.f32.mrb[17].mxu0 }
 0x107   : > { %v515_v28 = vadd.f32 %v1501_v40, %v514_v27  ;;  %1288 = vmatprep.mubr.msk.f32.mxu1 %vm636_vm1, %v607_v23 }
 0x108   : > { %1289 = vmatmul.mubr.msk.f32.gmra.mrb[12].mxu1 %vm636_vm1, %v608_v25  ;;  %v610_v31 = vmax.f32 %v520_v26, 0.0 }
 0x109   : > { %v609_v29 = vmax.f32 %v515_v28, 0.0  ;;  %v1240_v30 = vpop.f32.mrb[18].mxu0 }
 0x10a   : > { %v530_v32 = vadd.f32 %v1240_v30, %v1501_v40  ;;  %v524_v33 = vpop.f32.mrb[19].mxu0 }
 0x10b   : > { %v525_v34 = vadd.f32 %v1501_v40, %v524_v33  ;;  %1291 = vmatprep.mubr.msk.f32.mxu1 %vm636_vm1, %v609_v29 }
 0x10c   : > { %1292 = vmatmul.mubr.msk.f32.gmra.mrb[14].mxu1 %vm636_vm1, %v610_v31  ;;  %v612_v37 = vmax.f32 %v530_v32, 0.0 }
 0x10d   : > { %v611_v35 = vmax.f32 %v525_v34, 0.0  ;;  %v1243_v36 = vpop.f32.mrb[20].mxu0 }
 0x10e   : > { %v540_v38 = vadd.f32 %v1243_v36, %v1501_v40  ;;  %v534_v39 = vpop.f32.mrb[21].mxu0 }
 0x10f   : > { %v535_v41 = vadd.f32 %v1501_v40, %v534_v39  ;;  %1294 = vmatprep.mubr.msk.f32.mxu1 %vm636_vm1, %v611_v35 }
 0x110   : > { %1295 = vmatmul.mubr.msk.f32.gmra.mrb[16].mxu1 %vm636_vm1, %v612_v37  ;;  %v614_v44 = vmax.f32 %v540_v38, 0.0 }
 0x111   : > { %v613_v42 = vmax.f32 %v535_v41, 0.0  ;;  %v1246_v43 = vpop.f32.mrb[22].mxu0 }
 0x112   : > { %v550_v45 = vadd.f32 %v1246_v43, %v1501_v40  ;;  %v544_v46 = vpop.f32.mrb[23].mxu0 }
 0x113   : > { %v545_v47 = vadd.f32 %v1501_v40, %v544_v46  ;;  %1297 = vmatprep.mubr.msk.f32.mxu1 %vm636_vm1, %v613_v42 }
 0x114   : > { %1298 = vmatmul.mubr.msk.f32.gmra.mrb[18].mxu1 %vm636_vm1, %v614_v44  ;;  %v616_v50 = vmax.f32 %v550_v45, 0.0 }
 0x115   : > { %v615_v48 = vmax.f32 %v545_v47, 0.0  ;;  %v1249_v49 = vpop.f32.mrb[24].mxu0 }
 0x116   : > { %v560_v51 = vadd.f32 %v1249_v49, %v1501_v40  ;;  %v554_v52 = vpop.f32.mrb[25].mxu0 }
 0x117   : > { %v555_v53 = vadd.f32 %v1501_v40, %v554_v52  ;;  %1300 = vmatprep.mubr.msk.f32.mxu1 %vm636_vm1, %v615_v48 }
 0x118   : > { %1301 = vmatmul.mubr.msk.f32.gmra.mrb[20].mxu1 %vm636_vm1, %v616_v50  ;;  %v618_v56 = vmax.f32 %v560_v51, 0.0 }
 0x119   : > { %v617_v54 = vmax.f32 %v555_v53, 0.0  ;;  %v1252_v55 = vpop.f32.mrb[26].mxu0 }
 0x11a   : > { %v570_v57 = vadd.f32 %v1252_v55, %v1501_v40  ;;  %v564_v58 = vpop.f32.mrb[27].mxu0 }
 0x11b   : > { %v565_v59 = vadd.f32 %v1501_v40, %v564_v58  ;;  %1303 = vmatprep.mubr.msk.f32.mxu1 %vm636_vm1, %v617_v54 }
 0x11c   : > { %1304 = vmatmul.mubr.msk.f32.gmra.mrb[22].mxu1 %vm636_vm1, %v618_v56  ;;  %v620_v62 = vmax.f32 %v570_v57, 0.0 }
 0x11d   : > { %v619_v60 = vmax.f32 %v565_v59, 0.0  ;;  %v1255_v61 = vpop.f32.mrb[28].mxu0 }
 0x11e   : > { %v580_v63 = vadd.f32 %v1255_v61, %v1501_v40  ;;  %v574_v0 = vpop.f32.mrb[29].mxu0 }
 0x11f   : > { %v575_v1 = vadd.f32 %v1501_v40, %v574_v0  ;;  %1306 = vmatprep.mubr.msk.f32.mxu1 %vm636_vm1, %v619_v60 }
 0x120   : > { %1307 = vmatmul.mubr.msk.f32.gmra.mrb[24].mxu1 %vm636_vm1, %v620_v62  ;;  %v622_v4 = vmax.f32 %v580_v63, 0.0 }
 0x121   : > { %v621_v2 = vmax.f32 %v575_v1, 0.0  ;;  %v1258_v3 = vpop.f32.mrb[30].mxu0 }
 0x122   : > { %v590_v5 = vadd.f32 %v1258_v3, %v1501_v40  ;;  %v584_v6 = vpop.f32.mrb[31].mxu0 }
 0x123   : > { %v585_v7 = vadd.f32 %v1501_v40, %v584_v6  ;;  %1309 = vmatprep.mubr.msk.f32.mxu1 %vm636_vm1, %v621_v2 }
 0x124   : > { %1310 = vmatmul.mubr.msk.f32.gmra.mrb[26].mxu1 %vm636_vm1, %v622_v4  ;;  %v624_v9 = vmax.f32 %v590_v5, 0.0 }
 0x125   : > { %v623_v8 = vmax.f32 %v585_v7, 0.0 }
 0x127   : > { %1312 = vmatprep.mubr.msk.f32.mxu1 %vm636_vm1, %v623_v8 }
 0x128   : > { %1313 = vmatmul.mubr.msk.f32.gmra.mrb[28].mxu1 %vm636_vm1, %v624_v9 }
 0x1bf   : > { %v1269_v40 = vpop.f32.mrb[32].mxu0 }
 0x1c0   : > { %v817_v11 = vadd.f32 %v1269_v40, %v1570_v10  ;;  %v811_v12 = vpop.f32.mrb[33].mxu0 }
 0x1c1   : > { %v812_v13 = vadd.f32 %v1570_v10, %v811_v12 }
 0x1c2   : > { %971 = vst.msk [vmem:[%s1577_s16 + $0x8] sm:$0xff] %vm268_vm0, %v817_v11 }
 0x1c3   : > { %970 = vst.msk [vmem:[%s1577_s16] sm:$0xff] %vm268_vm0, %v812_v13  ;;  %v1272_v14 = vpop.f32.mrb[0].mxu1 }
 0x1c4   : > { %v827_v15 = vadd.f32 %v1272_v14, %v1570_v10  ;;  %v821_v16 = vpop.f32.mrb[1].mxu1 }
 0x1c5   : > { %v822_v17 = vadd.f32 %v1570_v10, %v821_v16 }
 0x1c6   : > { %973 = vst.msk [vmem:[%s1577_s16 + $0x18] sm:$0xff] %vm268_vm0, %v827_v15 }
 0x1c7   : > { %972 = vst.msk [vmem:[%s1577_s16 + $0x10] sm:$0xff] %vm268_vm0, %v822_v17  ;;  %v1275_v18 = vpop.f32.mrb[2].mxu1 }
 0x1c8   : > { %v837_v19 = vadd.f32 %v1275_v18, %v1570_v10  ;;  %v831_v20 = vpop.f32.mrb[3].mxu1 }
 0x1c9   : > { %v832_v21 = vadd.f32 %v1570_v10, %v831_v20 }
 0x1ca   : > { %975 = vst.msk [vmem:[%s1577_s16 + $0x28] sm:$0xff] %vm268_vm0, %v837_v19 }
 0x1cb   : > { %974 = vst.msk [vmem:[%s1577_s16 + $0x20] sm:$0xff] %vm268_vm0, %v832_v21  ;;  %v1278_v22 = vpop.f32.mrb[4].mxu1 }
 0x1cc   : > { %v847_v23 = vadd.f32 %v1278_v22, %v1570_v10  ;;  %v841_v24 = vpop.f32.mrb[5].mxu1 }
 0x1cd   : > { %v842_v25 = vadd.f32 %v1570_v10, %v841_v24 }
 0x1ce   : > { %977 = vst.msk [vmem:[%s1577_s16 + $0x38] sm:$0xff] %vm268_vm0, %v847_v23 }
 0x1cf   : > { %976 = vst.msk [vmem:[%s1577_s16 + $0x30] sm:$0xff] %vm268_vm0, %v842_v25  ;;  %v1281_v26 = vpop.f32.mrb[6].mxu1 }
 0x1d0   : > { %v857_v27 = vadd.f32 %v1281_v26, %v1570_v10  ;;  %v851_v28 = vpop.f32.mrb[7].mxu1 }
 0x1d1   : > { %v852_v29 = vadd.f32 %v1570_v10, %v851_v28 }
 0x1d2   : > { %979 = vst.msk [vmem:[%s1577_s16 + $0x48] sm:$0xff] %vm268_vm0, %v857_v27 }
 0x1d3   : > { %978 = vst.msk [vmem:[%s1577_s16 + $0x40] sm:$0xff] %vm268_vm0, %v852_v29  ;;  %v1284_v30 = vpop.f32.mrb[8].mxu1 }
 0x1d4   : > { %v867_v31 = vadd.f32 %v1284_v30, %v1570_v10  ;;  %v861_v32 = vpop.f32.mrb[9].mxu1 }
 0x1d5   : > { %v862_v33 = vadd.f32 %v1570_v10, %v861_v32 }
 0x1d6   : > { %981 = vst.msk [vmem:[%s1577_s16 + $0x58] sm:$0xff] %vm268_vm0, %v867_v31 }
 0x1d7   : > { %980 = vst.msk [vmem:[%s1577_s16 + $0x50] sm:$0xff] %vm268_vm0, %v862_v33  ;;  %v1287_v34 = vpop.f32.mrb[10].mxu1 }
 0x1d8   : > { %v877_v35 = vadd.f32 %v1287_v34, %v1570_v10  ;;  %v871_v36 = vpop.f32.mrb[11].mxu1 }
 0x1d9   : > { %v872_v37 = vadd.f32 %v1570_v10, %v871_v36 }
 0x1da   : > { %983 = vst.msk [vmem:[%s1577_s16 + $0x68] sm:$0xff] %vm268_vm0, %v877_v35 }
 0x1db   : > { %982 = vst.msk [vmem:[%s1577_s16 + $0x60] sm:$0xff] %vm268_vm0, %v872_v37  ;;  %v1290_v38 = vpop.f32.mrb[12].mxu1 }
 0x1dc   : > { %v887_v39 = vadd.f32 %v1290_v38, %v1570_v10  ;;  %v881_v41 = vpop.f32.mrb[13].mxu1 }
 0x1dd   : > { %v882_v42 = vadd.f32 %v1570_v10, %v881_v41 }
 0x1de   : > { %985 = vst.msk [vmem:[%s1577_s16 + $0x78] sm:$0xff] %vm268_vm0, %v887_v39 }
 0x1df   : > { %984 = vst.msk [vmem:[%s1577_s16 + $0x70] sm:$0xff] %vm268_vm0, %v882_v42  ;;  %v1293_v43 = vpop.f32.mrb[14].mxu1 }
 0x1e0   : > { %v897_v44 = vadd.f32 %v1293_v43, %v1570_v10  ;;  %v891_v45 = vpop.f32.mrb[15].mxu1 }
 0x1e1   : > { %v892_v46 = vadd.f32 %v1570_v10, %v891_v45 }
 0x1e2   : > { %987 = vst.msk [vmem:[%s1577_s16 + $0x88] sm:$0xff] %vm268_vm0, %v897_v44 }
 0x1e3   : > { %986 = vst.msk [vmem:[%s1577_s16 + $0x80] sm:$0xff] %vm268_vm0, %v892_v46  ;;  %v1296_v47 = vpop.f32.mrb[16].mxu1 }
 0x1e4   : > { %v907_v48 = vadd.f32 %v1296_v47, %v1570_v10  ;;  %v901_v49 = vpop.f32.mrb[17].mxu1 }
 0x1e5   : > { %v902_v50 = vadd.f32 %v1570_v10, %v901_v49 }
 0x1e6   : > { %989 = vst.msk [vmem:[%s1577_s16 + $0x98] sm:$0xff] %vm268_vm0, %v907_v48 }
 0x1e7   : > { %988 = vst.msk [vmem:[%s1577_s16 + $0x90] sm:$0xff] %vm268_vm0, %v902_v50  ;;  %v1299_v51 = vpop.f32.mrb[18].mxu1 }
 0x1e8   : > { %v917_v52 = vadd.f32 %v1299_v51, %v1570_v10  ;;  %v911_v53 = vpop.f32.mrb[19].mxu1 }
 0x1e9   : > { %v912_v54 = vadd.f32 %v1570_v10, %v911_v53 }
 0x1ea   : > { %991 = vst.msk [vmem:[%s1577_s16 + $0xa8] sm:$0xff] %vm268_vm0, %v917_v52 }
 0x1eb   : > { %990 = vst.msk [vmem:[%s1577_s16 + $0xa0] sm:$0xff] %vm268_vm0, %v912_v54  ;;  %v1302_v55 = vpop.f32.mrb[20].mxu1 }
 0x1ec   : > { %v927_v56 = vadd.f32 %v1302_v55, %v1570_v10  ;;  %v921_v57 = vpop.f32.mrb[21].mxu1 }
 0x1ed   : > { %v922_v58 = vadd.f32 %v1570_v10, %v921_v57 }
 0x1ee   : > { %993 = vst.msk [vmem:[%s1577_s16 + $0xb8] sm:$0xff] %vm268_vm0, %v927_v56 }
 0x1ef   : > { %992 = vst.msk [vmem:[%s1577_s16 + $0xb0] sm:$0xff] %vm268_vm0, %v922_v58  ;;  %v1305_v59 = vpop.f32.mrb[22].mxu1 }
 0x1f0   : > { %v937_v60 = vadd.f32 %v1305_v59, %v1570_v10  ;;  %v931_v61 = vpop.f32.mrb[23].mxu1 }
 0x1f1   : > { %v932_v62 = vadd.f32 %v1570_v10, %v931_v61 }
 0x1f2   : > { %995 = vst.msk [vmem:[%s1577_s16 + $0xc8] sm:$0xff] %vm268_vm0, %v937_v60 }
 0x1f3   : > { %994 = vst.msk [vmem:[%s1577_s16 + $0xc0] sm:$0xff] %vm268_vm0, %v932_v62  ;;  %v1308_v63 = vpop.f32.mrb[24].mxu1 }
 0x1f4   : > { %v947_v0 = vadd.f32 %v1308_v63, %v1570_v10  ;;  %v941_v1 = vpop.f32.mrb[25].mxu1 }
 0x1f5   : > { %v942_v2 = vadd.f32 %v1570_v10, %v941_v1 }
 0x1f6   : > { %997 = vst.msk [vmem:[%s1577_s16 + $0xd8] sm:$0xff] %vm268_vm0, %v947_v0 }
 0x1f7   : > { %996 = vst.msk [vmem:[%s1577_s16 + $0xd0] sm:$0xff] %vm268_vm0, %v942_v2  ;;  %v1311_v3 = vpop.f32.mrb[26].mxu1 }
 0x1f8   : > { %v957_v4 = vadd.f32 %v1311_v3, %v1570_v10  ;;  %v951_v5 = vpop.f32.mrb[27].mxu1 }
 0x1f9   : > { %v952_v6 = vadd.f32 %v1570_v10, %v951_v5 }
 0x1fa   : > { %999 = vst.msk [vmem:[%s1577_s16 + $0xe8] sm:$0xff] %vm268_vm0, %v957_v4 }
 0x1fb   : > { %998 = vst.msk [vmem:[%s1577_s16 + $0xe0] sm:$0xff] %vm268_vm0, %v952_v6  ;;  %v1314_v7 = vpop.f32.mrb[28].mxu1 }
 0x1fc   : > { %v967_v8 = vadd.f32 %v1314_v7, %v1570_v10  ;;  %v961_v9 = vpop.f32.mrb[29].mxu1 }
 0x1fd   : > { %v962_v40 = vadd.f32 %v1570_v10, %v961_v9 }
 0x1fe   : > { %1001 = vst.msk [vmem:[%s1577_s16 + $0xf8] sm:$0xff] %vm268_vm0, %v967_v8 }
 0x1ff   : > { %1000 = vst.msk [vmem:[%s1577_s16 + $0xf0] sm:$0xff] %vm268_vm0, %v962_v40 }
 0x200 PF: > { %s15_s18 = sadd.s32 1, %s1345_s18  }
 0x201   : > { %p12_p4 = scmp.ge.s32.totalorder %s15_s18, 4  }
 0x203   :  { %14 = sbr.rel (!%p12_p4) target bundleno = 1 (0x1), region = 70 }

</bundles_post_ra>
